<compile_context>
chip_gen: v7x
topology: tpu7x:2x2x1
jax: 0.10.0
libtpu: 0.0.40
codegen_flags: <defaults>
</compile_context>

<pallas_src>
import jax
import jax.numpy as jnp
from jax.experimental import pallas as pl
from jax.experimental.pallas import tpu as pltpu

NEG_SLOPE = 0.01  # nn.LeakyReLU default
BN_EPS = 1e-5     # nn.BatchNorm1d default


def _round_up(n, m):
    return ((n + m - 1) // m) * m


def _pad2d(a, rows, cols):
    r, c = a.shape
    return jnp.pad(a, ((0, rows - r), (0, cols - c)))


def _leaky_relu(x):
    return jnp.where(x > 0, x, NEG_SLOPE * x)


# --------------------------------------------------------------------------------------
# Kernel: fully fused MLP on one batch tile.
# --------------------------------------------------------------------------------------
def hfnet_kernel(
    x_ref,
    w1_ref, t1_ref,
    w2_ref, t2_ref,
    w3_ref, t3_ref,
    w4_ref, t4_ref,
    o_ref,
):
    def hidden_layer(h, w_ref, t_ref):
        # bf16 (or f32) operands, f32 MXU accumulation; activation on f32, then one cast.
        y = jnp.dot(h, w_ref[...], preferred_element_type=jnp.float32) + t_ref[...]
        return _leaky_relu(y).astype(w_ref.dtype)

    h = hidden_layer(x_ref[...], w1_ref, t1_ref)   # Linear(F,256)+BN+LeakyReLU (+Dropout=id)
    h = hidden_layer(h, w2_ref, t2_ref)            # Linear(256,128)+BN+LeakyReLU
    h = hidden_layer(h, w3_ref, t3_ref)            # Linear(128,64->pad128)+BN+LeakyReLU
    y = jnp.dot(h, w4_ref[...], preferred_element_type=jnp.float32) + t4_ref[...]  # head
    # Store only the true output width (narrow store; byte reduction dominates here).
    o_ref[...] = y[:, : o_ref.shape[1]].astype(o_ref.dtype)


# --------------------------------------------------------------------------------------
# Parameter prep: fold BatchNorm into Linear; pad only the internal hidden/head dims.
# --------------------------------------------------------------------------------------
def fold_and_pad_params(raw, input_size, output_size, matmul_dtype=jnp.bfloat16):
    h3_pad = _round_up(64, 128)            # 64 -> 128 (lane-dense intermediate)
    out_pad = _round_up(output_size, 128)  # head N padded for the MXU; value sliced in-kernel

    pad_in = [input_size, 256, 128]        # K dims (input features stay UNPADDED)
    pad_out = [256, 128, h3_pad]           # N dims

    folded = {}
    for idx in range(1, 4):
        w = raw[f"w{idx}"]
        b = raw[f"b{idx}"]
        scale = raw[f"gamma{idx}"] / jnp.sqrt(raw[f"var{idx}"] + BN_EPS)
        shift = raw[f"beta{idx}"] - raw[f"mean{idx}"] * scale
        w_f = w * scale[None, :]           # fold BN scale into weight columns
        t_f = b * scale + shift            # fold Linear bias into BN shift
        folded[f"w{idx}"] = _pad2d(w_f, pad_in[idx - 1], pad_out[idx - 1]).astype(matmul_dtype)
        folded[f"t{idx}"] = _pad2d(t_f[None, :], 1, pad_out[idx - 1]).astype(jnp.float32)

    folded["w4"] = _pad2d(raw["w4"], h3_pad, out_pad).astype(matmul_dtype)
    folded["t4"] = _pad2d(raw["b4"][None, :], 1, out_pad).astype(jnp.float32)
    return folded


# --------------------------------------------------------------------------------------
# Wrapper
# --------------------------------------------------------------------------------------
def improved_hfnet_forward(x, raw_params, *, block_b=2048, matmul_dtype=jnp.bfloat16):
    """Fused forward pass. x: (B, input_size) float32. Returns (B, output_size) float32."""
    B, F = x.shape
    out_size = raw_params["w4"].shape[1]

    folded = fold_and_pad_params(raw_params, F, out_size, matmul_dtype)

    # Batch tile: large (amortize ~0.35us/step fixed overhead, long DMA bursts),
    # multiple of 16 (bf16 sublane packing), capped at 4096 (v7x 64 MiB VMEM headroom),
    # and capped near B/2 so the ("parallel",) grid has >= 2 steps for megacore sharding.
    target = min(block_b, 4096)
    if B > 16:
        target = min(target, _round_up(pl.cdiv(B, 2), 16))
    bb = max(16, _round_up(min(target, _round_up(B, 16)), 16))
    b_pad = _round_up(B, bb)

    xm = x.astype(matmul_dtype)                      # cast once in HBM; halves input DMA bytes
    if b_pad != B:
        xm = jnp.pad(xm, ((0, b_pad - B), (0, 0)))   # batch pad only; features stay unpadded

    grid = (b_pad // bb,)

    def full_spec(arr):
        r, c = arr.shape
        return pl.BlockSpec((r, c), lambda i: (0, 0))  # constant block index -> no re-DMA

    order = ["w1", "t1", "w2", "t2", "w3", "t3", "w4", "t4"]
    in_specs = [pl.BlockSpec((bb, F), lambda i: (i, 0))] + [full_spec(folded[k]) for k in order]
    out_spec = pl.BlockSpec((bb, out_size), lambda i: (i, 0))

    # Advisory cost estimate (unpadded I/O bytes) for the XLA scheduler.
    h3_pad = folded["w3"].shape[1]
    out_pad = folded["w4"].shape[1]
    flops = 2 * b_pad * (F * 256 + 256 * 128 + 128 * h3_pad + h3_pad * out_pad)
    param_bytes = sum(int(folded[k].size) * folded[k].dtype.itemsize for k in order)
    bytes_accessed = (int(xm.size) * xm.dtype.itemsize
                      + b_pad * out_size * 4 + param_bytes)

    out = pl.pallas_call(
        hfnet_kernel,
        out_shape=jax.ShapeDtypeStruct((b_pad, out_size), jnp.float32),
        grid_spec=pltpu.PrefetchScalarGridSpec(
            num_scalar_prefetch=0,
            grid=grid,
            in_specs=in_specs,
            out_specs=out_spec,
        ),
        compiler_params=pltpu.CompilerParams(
            dimension_semantics=("parallel",),
        ),
        cost_estimate=pl.CostEstimate(
            flops=flops, transcendentals=0, bytes_accessed=bytes_accessed),
    )(xm, *[folded[k] for k in order])

    return out[:B] if b_pad != B else out


# --------------------------------------------------------------------------------------
# Synthetic parameters matching ImprovedHFNet layer shapes (PyTorch Linear init style)
# --------------------------------------------------------------------------------------
def init_params(key, input_size, output_size):
    dims = [(input_size, 256), (256, 128), (128, 64), (64, output_size)]
    params = {}
    for idx, (fan_in, fan_out) in enumerate(dims, start=1):
        key, kw, kb = jax.random.split(key, 3)
        bound = 1.0 / jnp.sqrt(jnp.float32(fan_in))
        # PyTorch Linear stores weight as (out, in); kept transposed (in, out) for x @ W.
        params[f"w{idx}"] = jax.random.uniform(
            kw, (fan_in, fan_out), jnp.float32, minval=-bound, maxval=bound)
        params[f"b{idx}"] = jax.random.uniform(
            kb, (fan_out,), jnp.float32, minval=-bound, maxval=bound)
        if idx <= 3:  # BatchNorm1d after the first three Linears (eval-mode running stats)
            key, kg, kbt, km, kv = jax.random.split(key, 5)
            params[f"gamma{idx}"] = 1.0 + 0.1 * jax.random.normal(kg, (fan_out,), jnp.float32)
            params[f"beta{idx}"] = 0.1 * jax.random.normal(kbt, (fan_out,), jnp.float32)
            params[f"mean{idx}"] = 0.1 * jax.random.normal(km, (fan_out,), jnp.float32)
            params[f"var{idx}"] = jnp.abs(jax.random.normal(kv, (fan_out,), jnp.float32)) + 0.5
    return params


# --------------------------------------------------------------------------------------
# References
# --------------------------------------------------------------------------------------
def reference_forward(x, raw):
    """Pure-JAX f32 reference of ImprovedHFNet in eval mode."""
    h = x
    for idx in range(1, 4):
        h = jnp.dot(h, raw[f"w{idx}"], precision=jax.lax.Precision.HIGHEST) + raw[f"b{idx}"]
        inv = raw[f"gamma{idx}"] / jnp.sqrt(raw[f"var{idx}"] + BN_EPS)
        h = (h - raw[f"mean{idx}"]) * inv + raw[f"beta{idx}"]
        h = jnp.where(h > 0, h, NEG_SLOPE * h)
        # Dropout: identity in eval mode.
    return jnp.dot(h, raw["w4"], precision=jax.lax.Precision.HIGHEST) + raw["b4"]


def reference_forward_mirrored(x, raw, matmul_dtype=jnp.bfloat16):
    """Reference mirroring the kernel numerics (fold + pad + bf16 operands/activations)."""
    B, F = x.shape
    out_size = raw["w4"].shape[1]
    folded = fold_and_pad_params(raw, F, out_size, matmul_dtype)
    h = x.astype(matmul_dtype)
    for idx in range(1, 4):
        w = folded[f"w{idx}"]
        t = folded[f"t{idx}"]
        y = jnp.dot(h, w, preferred_element_type=jnp.float32) + t
        h = jnp.where(y > 0, y, NEG_SLOPE * y).astype(matmul_dtype)
    y = jnp.dot(h, folded["w4"], preferred_element_type=jnp.float32) + folded["t4"]
    return y[:, :out_size]


if __name__ == "__main__":
    INPUT_SIZE = 32
    OUTPUT_SIZE = 8
    BATCH = 64  # small example (gives a 2-step grid); for real benchmarking use B >= 4096

    key = jax.random.PRNGKey(0)
    key, kx = jax.random.split(key)
    x = jax.random.normal(kx, (BATCH, INPUT_SIZE), jnp.float32)
    raw = init_params(key, INPUT_SIZE, OUTPUT_SIZE)

    ref32 = reference_forward(x, raw)

    # 1) f32-matmul path: tight check vs pure-JAX reference.
    out32 = jax.block_until_ready(
        improved_hfnet_forward(x, raw, matmul_dtype=jnp.float32))
    assert out32.shape == (BATCH, OUTPUT_SIZE)
    assert jnp.allclose(out32, ref32, atol=2e-3, rtol=2e-3), \
        "Pallas f32 output mismatch vs reference"

    # 2) default fast path (bf16 operands/activations, f32 accumulation):
    #    check vs a reference that mirrors the kernel numerics.
    out16 = jax.block_until_ready(improved_hfnet_forward(x, raw))
    ref16 = reference_forward_mirrored(x, raw, matmul_dtype=jnp.bfloat16)
    assert out16.shape == (BATCH, OUTPUT_SIZE)
    assert jnp.allclose(out16, ref16, atol=2e-3, rtol=2e-3), \
        "Pallas bf16 output mismatch vs mirrored reference"

    print("KERNEL_OK")
</pallas_src>

<mosaic_0001>
module attributes {stable_mosaic.version = 11 : i64} {
  func.func @hfnet_kernel(%arg0: i32, %arg1: memref<32x32xf32, #tpu.memory_space<vmem>>, %arg2: memref<32x256xf32, #tpu.memory_space<vmem>>, %arg3: memref<1x256xf32, #tpu.memory_space<vmem>>, %arg4: memref<256x128xf32, #tpu.memory_space<vmem>>, %arg5: memref<1x128xf32, #tpu.memory_space<vmem>>, %arg6: memref<128x128xf32, #tpu.memory_space<vmem>>, %arg7: memref<1x128xf32, #tpu.memory_space<vmem>>, %arg8: memref<128x128xf32, #tpu.memory_space<vmem>>, %arg9: memref<1x128xf32, #tpu.memory_space<vmem>>, %arg10: memref<32x8xf32, #tpu.memory_space<vmem>>) attributes {dimension_semantics = [#tpu.dimension_semantics<parallel>], iteration_bounds = array<i64: 2>, scalar_prefetch = 0 : i64, scratch_operands = 0 : i64, tpu.core_type = #tpu.core_type<tc>, window_params = [{transform_indices = @transform_0, window_bounds = array<i64: 32, 32>}, {pipeline_mode = #tpu.pipeline_mode<synchronous>, transform_indices = @transform_1, window_bounds = array<i64: 32, 256>}, {pipeline_mode = #tpu.pipeline_mode<synchronous>, transform_indices = @transform_2, window_bounds = array<i64: 1, 256>}, {pipeline_mode = #tpu.pipeline_mode<synchronous>, transform_indices = @transform_3, window_bounds = array<i64: 256, 128>}, {pipeline_mode = #tpu.pipeline_mode<synchronous>, transform_indices = @transform_4, window_bounds = array<i64: 1, 128>}, {pipeline_mode = #tpu.pipeline_mode<synchronous>, transform_indices = @transform_5, window_bounds = array<i64: 128, 128>}, {pipeline_mode = #tpu.pipeline_mode<synchronous>, transform_indices = @transform_6, window_bounds = array<i64: 1, 128>}, {pipeline_mode = #tpu.pipeline_mode<synchronous>, transform_indices = @transform_7, window_bounds = array<i64: 128, 128>}, {pipeline_mode = #tpu.pipeline_mode<synchronous>, transform_indices = @transform_8, window_bounds = array<i64: 1, 128>}, {transform_indices = @transform_9, window_bounds = array<i64: 32, 8>}]} {
    %c0 = arith.constant 0 : index
    %c0_0 = arith.constant 0 : index
    %0 = vector.load %arg1[%c0, %c0_0] : memref<32x32xf32, #tpu.memory_space<vmem>>, vector<32x32xf32>
    %c0_1 = arith.constant 0 : index
    %c0_2 = arith.constant 0 : index
    %1 = vector.load %arg2[%c0_1, %c0_2] : memref<32x256xf32, #tpu.memory_space<vmem>>, vector<32x256xf32>
    %cst = arith.constant dense<0.000000e+00> : vector<32x256xf32>
    %2 = tpu.matmul %0, %1, %cst {dimension_numbers = #tpu.dot_dimension_numbers<[1], [0], [0], [1], [0, 0, 1, 1], [], []>} : vector<32x32xf32>, vector<32x256xf32>, vector<32x256xf32> -> vector<32x256xf32>
    %c0_3 = arith.constant 0 : index
    %c0_4 = arith.constant 0 : index
    %3 = vector.load %arg3[%c0_3, %c0_4] : memref<1x256xf32, #tpu.memory_space<vmem>>, vector<1x256xf32>
    %4 = vector.broadcast %3 : vector<1x256xf32> to vector<32x256xf32>
    %5 = arith.addf %2, %4 : vector<32x256xf32>
    %cst_5 = arith.constant 0.000000e+00 : f32
    %6 = vector.broadcast %cst_5 : f32 to vector<32x256xf32>
    %7 = arith.cmpf ogt, %5, %6 : vector<32x256xf32>
    %cst_6 = arith.constant 0.00999999977 : f32
    %8 = vector.broadcast %cst_6 : f32 to vector<32x256xf32>
    %9 = arith.mulf %8, %5 : vector<32x256xf32>
    %10 = arith.select %7, %5, %9 : vector<32x256xi1>, vector<32x256xf32>
    %c0_7 = arith.constant 0 : index
    %c0_8 = arith.constant 0 : index
    %11 = vector.load %arg4[%c0_7, %c0_8] : memref<256x128xf32, #tpu.memory_space<vmem>>, vector<256x128xf32>
    %cst_9 = arith.constant dense<0.000000e+00> : vector<32x128xf32>
    %12 = tpu.matmul %10, %11, %cst_9 {dimension_numbers = #tpu.dot_dimension_numbers<[1], [0], [0], [1], [0, 0, 1, 1], [], []>} : vector<32x256xf32>, vector<256x128xf32>, vector<32x128xf32> -> vector<32x128xf32>
    %c0_10 = arith.constant 0 : index
    %c0_11 = arith.constant 0 : index
    %13 = vector.load %arg5[%c0_10, %c0_11] : memref<1x128xf32, #tpu.memory_space<vmem>>, vector<1x128xf32>
    %14 = vector.broadcast %13 : vector<1x128xf32> to vector<32x128xf32>
    %15 = arith.addf %12, %14 : vector<32x128xf32>
    %cst_12 = arith.constant 0.000000e+00 : f32
    %16 = vector.broadcast %cst_12 : f32 to vector<32x128xf32>
    %17 = arith.cmpf ogt, %15, %16 : vector<32x128xf32>
    %cst_13 = arith.constant 0.00999999977 : f32
    %18 = vector.broadcast %cst_13 : f32 to vector<32x128xf32>
    %19 = arith.mulf %18, %15 : vector<32x128xf32>
    %20 = arith.select %17, %15, %19 : vector<32x128xi1>, vector<32x128xf32>
    %c0_14 = arith.constant 0 : index
    %c0_15 = arith.constant 0 : index
    %21 = vector.load %arg6[%c0_14, %c0_15] : memref<128x128xf32, #tpu.memory_space<vmem>>, vector<128x128xf32>
    %cst_16 = arith.constant dense<0.000000e+00> : vector<32x128xf32>
    %22 = tpu.matmul %20, %21, %cst_16 {dimension_numbers = #tpu.dot_dimension_numbers<[1], [0], [0], [1], [0, 0, 1, 1], [], []>} : vector<32x128xf32>, vector<128x128xf32>, vector<32x128xf32> -> vector<32x128xf32>
    %c0_17 = arith.constant 0 : index
    %c0_18 = arith.constant 0 : index
    %23 = vector.load %arg7[%c0_17, %c0_18] : memref<1x128xf32, #tpu.memory_space<vmem>>, vector<1x128xf32>
    %24 = vector.broadcast %23 : vector<1x128xf32> to vector<32x128xf32>
    %25 = arith.addf %22, %24 : vector<32x128xf32>
    %cst_19 = arith.constant 0.000000e+00 : f32
    %26 = vector.broadcast %cst_19 : f32 to vector<32x128xf32>
    %27 = arith.cmpf ogt, %25, %26 : vector<32x128xf32>
    %cst_20 = arith.constant 0.00999999977 : f32
    %28 = vector.broadcast %cst_20 : f32 to vector<32x128xf32>
    %29 = arith.mulf %28, %25 : vector<32x128xf32>
    %30 = arith.select %27, %25, %29 : vector<32x128xi1>, vector<32x128xf32>
    %c0_21 = arith.constant 0 : index
    %c0_22 = arith.constant 0 : index
    %31 = vector.load %arg8[%c0_21, %c0_22] : memref<128x128xf32, #tpu.memory_space<vmem>>, vector<128x128xf32>
    %cst_23 = arith.constant dense<0.000000e+00> : vector<32x128xf32>
    %32 = tpu.matmul %30, %31, %cst_23 {dimension_numbers = #tpu.dot_dimension_numbers<[1], [0], [0], [1], [0, 0, 1, 1], [], []>} : vector<32x128xf32>, vector<128x128xf32>, vector<32x128xf32> -> vector<32x128xf32>
    %c0_24 = arith.constant 0 : index
    %c0_25 = arith.constant 0 : index
    %33 = vector.load %arg9[%c0_24, %c0_25] : memref<1x128xf32, #tpu.memory_space<vmem>>, vector<1x128xf32>
    %34 = vector.broadcast %33 : vector<1x128xf32> to vector<32x128xf32>
    %35 = arith.addf %32, %34 : vector<32x128xf32>
    %36 = vector.extract_strided_slice %35 {offsets = [0, 0], sizes = [32, 8], strides = [1, 1]} : vector<32x128xf32> to vector<32x8xf32>
    %c0_26 = arith.constant 0 : index
    %c0_27 = arith.constant 0 : index
    %37 = vector.load %arg10[%c0_26, %c0_27] : memref<32x8xf32, #tpu.memory_space<vmem>>, vector<32x8xf32>
    tpu.vector_store %arg10[%c0_26, %c0_27], %36 {strides = array<i32>} : memref<32x8xf32, #tpu.memory_space<vmem>>, vector<32x8xf32>,
    return
  }
  func.func @transform_0(%arg0: i32) -> (i32, i32) {
    %c0_i32 = arith.constant 0 : i32
    %c0_i32_0 = arith.constant 0 : i32
    return %arg0, %c0_i32 : i32, i32
  }
  func.func @transform_1(%arg0: i32) -> (i32, i32) {
    %c0_i32 = arith.constant 0 : i32
    %c0_i32_0 = arith.constant 0 : i32
    %c0_i32_1 = arith.constant 0 : i32
    return %c0_i32, %c0_i32_0 : i32, i32
  }
  func.func @transform_2(%arg0: i32) -> (i32, i32) {
    %c0_i32 = arith.constant 0 : i32
    %c0_i32_0 = arith.constant 0 : i32
    %c0_i32_1 = arith.constant 0 : i32
    return %c0_i32, %c0_i32_0 : i32, i32
  }
  func.func @transform_3(%arg0: i32) -> (i32, i32) {
    %c0_i32 = arith.constant 0 : i32
    %c0_i32_0 = arith.constant 0 : i32
    %c0_i32_1 = arith.constant 0 : i32
    return %c0_i32, %c0_i32_0 : i32, i32
  }
  func.func @transform_4(%arg0: i32) -> (i32, i32) {
    %c0_i32 = arith.constant 0 : i32
    %c0_i32_0 = arith.constant 0 : i32
    %c0_i32_1 = arith.constant 0 : i32
    return %c0_i32, %c0_i32_0 : i32, i32
  }
  func.func @transform_5(%arg0: i32) -> (i32, i32) {
    %c0_i32 = arith.constant 0 : i32
    %c0_i32_0 = arith.constant 0 : i32
    %c0_i32_1 = arith.constant 0 : i32
    return %c0_i32, %c0_i32_0 : i32, i32
  }
  func.func @transform_6(%arg0: i32) -> (i32, i32) {
    %c0_i32 = arith.constant 0 : i32
    %c0_i32_0 = arith.constant 0 : i32
    %c0_i32_1 = arith.constant 0 : i32
    return %c0_i32, %c0_i32_0 : i32, i32
  }
  func.func @transform_7(%arg0: i32) -> (i32, i32) {
    %c0_i32 = arith.constant 0 : i32
    %c0_i32_0 = arith.constant 0 : i32
    %c0_i32_1 = arith.constant 0 : i32
    return %c0_i32, %c0_i32_0 : i32, i32
  }
  func.func @transform_8(%arg0: i32) -> (i32, i32) {
    %c0_i32 = arith.constant 0 : i32
    %c0_i32_0 = arith.constant 0 : i32
    %c0_i32_1 = arith.constant 0 : i32
    return %c0_i32, %c0_i32_0 : i32, i32
  }
  func.func @transform_9(%arg0: i32) -> (i32, i32) {
    %c0_i32 = arith.constant 0 : i32
    %c0_i32_0 = arith.constant 0 : i32
    return %arg0, %c0_i32 : i32, i32
  }
}

</mosaic_0001>

<bundles_post_ra>
// kernel: tpu_custom_call.1
= control target key start
LH: loop header
LB: loop body
LE: loop exit
PB: predicated region body
PF: predicated region fallthrough
CT: control target
= control target key end

     0   :  { %14 = vsyncpa [#allocation3], 0  ;;  %s1659_s0 = inlined_call_operand.vmem [shape: f32[64,32], index: 0, kind: input, shape index: {}]   ;;  %s1660_s1 = inlined_call_operand.vmem [shape: f32[32,256], index: 1, kind: input, shape index: {}]   ;;  %s1661_s2 = inlined_call_operand.vmem [shape: f32[1,256], index: 2, kind: input, shape index: {}]   ;;  %s1662_s3 = inlined_call_operand.hbm [shape: f32[256,128], index: 3, kind: input, shape index: {}]   ;;  %s1663_s4 = inlined_call_operand.vmem [shape: f32[1,128], index: 4, kind: input, shape index: {}]   ;;  %s1664_s5 = inlined_call_operand.hbm [shape: f32[128,128], index: 5, kind: input, shape index: {}]   ;;  %s1665_s6 = inlined_call_operand.vmem [shape: f32[1,128], index: 6, kind: input, shape index: {}]   ;;  %s1666_s7 = inlined_call_operand.hbm [shape: f32[128,128], index: 7, kind: input, shape index: {}]   ;;  %s1667_s8 = inlined_call_operand.vmem [shape: f32[1,128], index: 8, kind: input, shape index: {}]   ;;  %s1668_s9 = inlined_call_operand.vmem [shape: f32[64,8], index: 9, kind: output, shape index: {}]  }
   0x1   :  { %15 = vsyncpa [#allocation5], 0  ;;  %s1472_s30 = smov 0  }
   0x2 LB: > { %s986_s10 = sadd.s32 4294967295, %s1414_s30   ;;  %p988_p0 = scmp.ge.s32.totalorder %s1414_s30, 1  ;;  %s1414_s30 = sphi %s1472_s30, %s21_s30  }
   0x3   : > { %p246_p1 = scmp.lt.s32.totalorder %s1414_s30, 3  ;;  %p1482_p2 = scmp.eq.s32.totalorder %s986_s10, 0 }
   0x4   : > { %s1416_s13 = smov [#allocation4]   ;;  %s1417_s15 = smov [#allocation2]  }
   0x5   : > { %s1672_s11 = scalar_select %p1482_p2, 1, 0 }
   0x6   : > { %p1486_p3 = pnand %p988_p0, %p246_p1  ;;  %s280_s14 = sshll.u32 %s1416_s13, 4  ;;  %s281_s14 = int_to_ptr.vmem [resolvable:$true] %s280_s14 }
   0x7   : > { %s264_s16 = sshll.u32 %s1417_s15, 4  ;;  %s1418_s18 = smov [#allocation6]   ;;  %s1498_s16 = int_to_ptr.vmem [resolvable:$true] %s264_s16 }
   0x8   : > { %s1673_s12 = scalar_select %p1486_p3, 1, 0 }
   0x9   : > { %p1286_p4 = pneg %p1486_p3  ;;  %s296_s19 = sshll.u32 %s1418_s18, 4  ;;  %s1500_s19 = int_to_ptr.vmem [resolvable:$true] %s296_s19 }
   0xa   : > { %s1316_s22 = scalar_lea.hbm %s1664_s5, 2048 }
   0xb   : > { %p1494_p5 = pnand %p1482_p2, %p1286_p4  ;;  %p1317_p6 = scmp.ne.s32.totalorder %s1664_s5, %s1316_s22 }
   0xc   : > { %p1323_p10 = scmp.lt.u32.totalorder %s1316_s22, %s1664_s5 }
   0xd   : > { %p1510_p7 = pneg %p1494_p5 }
   0xf   : > { %p1319_p8 = pnand %p1510_p7, %p1317_p6 }
  0x11   : > { %p1320_p9 = pneg %p1319_p8 }
  0x13   : > { %p1325_p11 = pnand %p1323_p10, %p1320_p9 }
  0x15   : > { %1328 = shalt.err (!%p1325_p11)
}
  0x16   : > { %s1329_s28 = scalar_lea.vmem %s281_s14, 2048  ;;  %p1337_p1 = scmp.lt.s32.totalorder %s281_s14, %s281_s14 }
  0x17   : > { %p1330_p12 = scmp.ne.s32.totalorder %s281_s14, %s1329_s28  ;;  %p1338_p4 = scmp.lt.s32.totalorder %s1329_s28, %s1329_s28 }
  0x19   : > { %p1332_p13 = pnand %p1330_p12, %p1510_p7  ;;  %p1339_p2 = por %p1338_p4, %p1337_p1 }
  0x1b   : > { %p1333_p0 = pneg %p1332_p13 }
  0x1d   : > { %p1340_p3 = pnand %p1339_p2, %p1333_p0 }
  0x1f   : > { %1343 = shalt.err (!%p1340_p3)
}
  0x20   : > { %s1419_s29 = smov 128   ;;  %s1420_s13 = smov 8  }
  0x21   : > { %1292 = dma.hbm_to_vmem [thread:$0]  (!%p1494_p5), %s1664_s5, 2048, %s281_s14, [#allocation5], %s1419_s29, %s1419_s29, %s1420_s13  }
  0x22   : > { %s1344_s22 = scalar_lea.hbm %s1662_s3, 4096 }
  0x23   : > { %p1345_p2 = scmp.ne.s32.totalorder %s1662_s3, %s1344_s22  ;;  %p1351_p8 = scmp.lt.u32.totalorder %s1344_s22, %s1662_s3 }
  0x25   : > { %p1347_p3 = pnand %p1345_p2, %p1510_p7 }
  0x27   : > { %p1348_p6 = pneg %p1347_p3 }
  0x29   : > { %p1353_p9 = pnand %p1351_p8, %p1348_p6 }
  0x2b   : > { %1356 = shalt.err (!%p1353_p9)
}
  0x2c   : > { %s1357_s14 = scalar_lea.vmem %s1498_s16, 4096  ;;  %p1365_p13 = scmp.lt.s32.totalorder %s1498_s16, %s1498_s16 }
  0x2d   : > { %p1358_p10 = scmp.ne.s32.totalorder %s1498_s16, %s1357_s14  ;;  %p1366_p0 = scmp.lt.s32.totalorder %s1357_s14, %s1357_s14 }
  0x2f   : > { %p1360_p11 = pnand %p1358_p10, %p1510_p7  ;;  %p1367_p1 = por %p1366_p0, %p1365_p13 }
  0x31   : > { %p1361_p12 = pneg %p1360_p11 }
  0x33   : > { %p1368_p4 = pnand %p1367_p1, %p1361_p12 }
  0x35   : > { %1371 = shalt.err (!%p1368_p4)
}
  0x36   : > { %1289 = dma.hbm_to_vmem [thread:$0]  (!%p1494_p5), %s1662_s3, 4096, %s1498_s16, [#allocation3], %s1419_s29, %s1419_s29, %s1420_s13  }
  0x37   : > { %s1372_s21 = scalar_lea.hbm %s1666_s7, 2048 }
  0x38   : > { %p1373_p2 = scmp.ne.s32.totalorder %s1666_s7, %s1372_s21  ;;  %p1379_p8 = scmp.lt.u32.totalorder %s1372_s21, %s1666_s7 }
  0x3a   : > { %p1375_p3 = pnand %p1373_p2, %p1510_p7 }
  0x3c   : > { %p1376_p6 = pneg %p1375_p3 }
  0x3e   : > { %p1381_p9 = pnand %p1379_p8, %p1376_p6 }
  0x40   : > { %1384 = shalt.err (!%p1381_p9)
}
  0x41   : > { %s1385_s16 = scalar_lea.vmem %s1500_s19, 2048  ;;  %p1393_p13 = scmp.lt.s32.totalorder %s1500_s19, %s1500_s19 }
  0x42   : > { %p1386_p10 = scmp.ne.s32.totalorder %s1500_s19, %s1385_s16  ;;  %p1394_p0 = scmp.lt.s32.totalorder %s1385_s16, %s1385_s16 }
  0x44   : > { %p1388_p11 = pnand %p1386_p10, %p1510_p7  ;;  %p1395_p1 = por %p1394_p0, %p1393_p13 }
  0x46   : > { %p1389_p12 = pneg %p1388_p11 }
  0x48   : > { %p1396_p4 = pnand %p1395_p1, %p1389_p12 }
  0x4a   : > { %1399 = shalt.err (!%p1396_p4)
}
  0x4b   : > { %1295 = dma.hbm_to_vmem [thread:$0]  (!%p1494_p5), %s1666_s7, 2048, %s1500_s19, [#allocation5], %s1419_s29, %s1419_s29, %s1420_s13  }
  0x4c   : > { %p1676_p2 = scmp.ne.s32.totalorder %s1673_s12, 0 }
  0x4d   : > { %p1677_p7 = scmp.ne.s32.totalorder (!%p1676_p2), %s1672_s11, 0 }
  0x4e   : > { %324 = sbr.rel (%p1676_p2) target bundleno = 985 (0x3d9), region = 56 }
  0x55   : > { %1405 = dma.done.wait (%p1677_p7), [#allocation3], 4096  }
  0x56   : > { %1407 = vsyncadd (%p1677_p7), [#allocation3], 4294963200 }
  0x57   : > { %1409 = dma.done.wait (%p1677_p7), [#allocation5], 4096  }
  0x58   : > { %1411 = vsyncadd (%p1677_p7), [#allocation5], 4294963200  ;;  %s997_s17 = sshll.u32 %s986_s10, 2  ;;  %v1421_v0 = vmov 0.0   ;;  %v385_v1 = vld [vmem:[%s1660_s1 + $0x8] sm:$0xff]  ;;  %v387_v2 = vld [vmem:[%s1660_s1 + $0x18] sm:$0xff] }
  0x59   : > { %481 = vmatprep.mubr.f32.mxu0 %v1421_v0  ;;  %p369_p5 = scmp.lt.s32.totalorder %s997_s17, 7  ;;  %v384_v3 = vld [vmem:[%s1660_s1] sm:$0xff]  ;;  %v1170_v4 = vpack.c.bf16 %v387_v2, %v385_v1  ;;  %v386_v5 = vld [vmem:[%s1660_s1 + $0x10] sm:$0xff]  ;;  %v389_v6 = vld [vmem:[%s1660_s1 + $0x28] sm:$0xff]  ;;  %vm404_vm0 = vcmask 261120  }
  0x5a   : > { %v391_v7 = vld [vmem:[%s1660_s1 + $0x38] sm:$0xff]  ;;  %v1172_v8 = vpack.c.bf16 %v386_v5, %v384_v3  ;;  %v388_v10 = vld [vmem:[%s1660_s1 + $0x20] sm:$0xff]  ;;  %v390_v11 = vld [vmem:[%s1660_s1 + $0x30] sm:$0xff] }
  0x5b   : > { %s1679_s17 = smov (!%p369_p5, %s997_s17), 7  ;;  %v1174_v9 = vpack.c.bf16 %v391_v7, %v389_v6  ;;  %1171 = vmatprep.subr.bf16.mxu0 %v1170_v4  ;;  %v1176_v12 = vpack.c.bf16 %v390_v11, %v388_v10  ;;  %v546_v13 = vld [vmem:[#allocation2 + $0x80] sm:$0xff]  ;;  %v547_v14 = vld [vmem:[#allocation2 + $0x88] sm:$0xff]  ;;  %v548_v18 = vld [vmem:[#allocation2 + $0x90] sm:$0xff] }
  0x5c   : > { %s998_s16 = sshll.u32 %s1679_s17, 3  ;;  %1173 = vmatpush1.bf16.msra.mxu0 %v1172_v8  ;;  %v530_v15 = vld [vmem:[#allocation2] sm:$0xff]  ;;  %v1178_v16 = vpack.c.bf16 %v547_v14, %v546_v13  ;;  %v531_v17 = vld [vmem:[#allocation2 + $0x8] sm:$0xff]  ;;  %v549_v19 = vld [vmem:[#allocation2 + $0x98] sm:$0xff] }
  0x5d   : > { %1175 = vmatprep.subr.bf16.mxu0 %v1174_v9  ;;  %s1626_s12 = scalar_lea.vmem %s1659_s0, %s998_s16  ;;  %v1180_v20 = vpack.c.bf16 %v531_v17, %v530_v15  ;;  %v1182_v21 = vpack.c.bf16 %v549_v19, %v548_v18  ;;  %v532_v22 = vld [vmem:[#allocation2 + $0x10] sm:$0xff]  ;;  %v533_v23 = vld [vmem:[#allocation2 + $0x18] sm:$0xff]  ;;  %v550_v24 = vld [vmem:[#allocation2 + $0xa0] sm:$0xff]  ;;  %s378_s21 = scalar_lea.vmem %s1668_s9, %s998_s16 }
  0x5e   : > { %1179 = vmatprep.subr.bf16.mxu1 %v1178_v16  ;;  %v551_v25 = vld [vmem:[#allocation2 + $0xa8] sm:$0xff]  ;;  %v380_v26 = vld [vmem:[%s1626_s12] sm:$0xff]  ;;  %v1184_v27 = vpack.c.bf16 %v533_v23, %v532_v22  ;;  %v552_v31 = vld [vmem:[#allocation2 + $0xb0] sm:$0xff]  ;;  %v394_v16 = vlaneseq }
  0x5f   : > { %1181 = vmatpush3.bf16.msra.mxu1 %v1180_v20  ;;  %v1186_v28 = vpack.c.bf16 %v551_v25, %v550_v24  ;;  %v534_v29 = vld [vmem:[#allocation2 + $0x20] sm:$0xff]  ;;  %v535_v30 = vld [vmem:[#allocation2 + $0x28] sm:$0xff]  ;;  %v553_v32 = vld [vmem:[#allocation2 + $0xb8] sm:$0xff] }
  0x60   : > { %1177 = vmatpush1.bf16.msra.mxu0 %v1176_v12  ;;  %1183 = vmatprep.subr.bf16.mxu1 %v1182_v21  ;;  %v381_v33 = vld [vmem:[%s1626_s12 + $0x8] sm:$0xff]  ;;  %v1188_v34 = vpack.c.bf16 %v535_v30, %v534_v29  ;;  %v1190_v35 = vpack.c.bf16 %v553_v32, %v552_v31  ;;  %v536_v36 = vld [vmem:[#allocation2 + $0x30] sm:$0xff]  ;;  %v537_v37 = vld [vmem:[#allocation2 + $0x38] sm:$0xff]  ;;  %v395_v17 = vshrl.u32 %v394_v16, 7 }
  0x61   : > { %v554_v38 = vld [vmem:[#allocation2 + $0xc0] sm:$0xff]  ;;  %v555_v39 = vld [vmem:[#allocation2 + $0xc8] sm:$0xff]  ;;  %v382_v40 = vld [vmem:[%s1626_s12 + $0x10] sm:$0xff]  ;;  %v1192_v41 = vpack.c.bf16 %v537_v37, %v536_v36 }
  0x62   : > { %v1194_v42 = vpack.c.bf16 %v555_v39, %v554_v38  ;;  %v538_v43 = vld [vmem:[#allocation2 + $0x40] sm:$0xff]  ;;  %v539_v44 = vld [vmem:[#allocation2 + $0x48] sm:$0xff]  ;;  %v556_v45 = vld [vmem:[#allocation2 + $0xd0] sm:$0xff]  ;;  %v396_v18 = vsub.s32 0, %v395_v17  ;;  %v400_v20 = vsub.s32 1, %v395_v17 }
  0x63   : > { %1001 = vmatmul.mubr.msk.f32.vlgmr.msra.gmra.mrb[0].mxu0 %vm404_vm0, %v380_v26  ;;  %1185 = vmatpush3.bf16.msra.mxu1 %v1184_v27  ;;  %v557_v46 = vld [vmem:[#allocation2 + $0xd8] sm:$0xff]  ;;  %v1196_v48 = vpack.c.bf16 %v539_v44, %v538_v43  ;;  %v540_v50 = vld [vmem:[#allocation2 + $0x50] sm:$0xff]  ;;  %v558_v53 = vld [vmem:[#allocation2 + $0xe0] sm:$0xff] }
  0x64   : > { %487 = vmatprep.mubr.f32.mxu0 %v1421_v0  ;;  %1187 = vmatprep.subr.bf16.mxu1 %v1186_v28  ;;  %v383_v47 = vld [vmem:[%s1626_s12 + $0x18] sm:$0xff]  ;;  %v1198_v49 = vpack.c.bf16 %v557_v46, %v556_v45  ;;  %v559_v54 = vld [vmem:[#allocation2 + $0xe8] sm:$0xff]  ;;  %v542_v56 = vld [vmem:[#allocation2 + $0x60] sm:$0xff] }
  0x65   : > { %v541_v51 = vld [vmem:[#allocation2 + $0x58] sm:$0xff]  ;;  %v1202_v55 = vpack.c.bf16 %v559_v54, %v558_v53  ;;  %v543_v57 = vld [vmem:[#allocation2 + $0x68] sm:$0xff]  ;;  %v560_v59 = vld [vmem:[#allocation2 + $0xf0] sm:$0xff] }
  0x66   : > { %v1200_v52 = vpack.c.bf16 %v541_v51, %v540_v50  ;;  %v1204_v58 = vpack.c.bf16 %v543_v57, %v542_v56  ;;  %v561_v60 = vld [vmem:[#allocation2 + $0xf8] sm:$0xff]  ;;  %v544_v62 = vld [vmem:[#allocation2 + $0x70] sm:$0xff]  ;;  %v666_v1 = vld [vmem:[#allocation4] sm:$0xff] }
  0x67   : > { %1002 = vmatmul.mubr.msk.f32.gmra.mrb[2].mxu0 %vm404_vm0, %v381_v33  ;;  %1189 = vmatpush3.bf16.msra.mxu1 %v1188_v34  ;;  %v1206_v61 = vpack.c.bf16 %v561_v60, %v560_v59  ;;  %v545_v63 = vld [vmem:[#allocation2 + $0x78] sm:$0xff]  ;;  %v667_v2 = vld [vmem:[#allocation4 + $0x8] sm:$0xff]  ;;  %v668_v3 = vld [vmem:[#allocation4 + $0x10] sm:$0xff] }
  0x68   : > { %493 = vmatprep.mubr.f32.mxu0 %v1421_v0  ;;  %1191 = vmatprep.subr.bf16.mxu1 %v1190_v35  ;;  %v1210_v4 = vpack.c.bf16 %v667_v2, %v666_v1  ;;  %v669_v5 = vld [vmem:[#allocation4 + $0x18] sm:$0xff]  ;;  %v670_v7 = vld [vmem:[#allocation4 + $0x20] sm:$0xff]  ;;  %v671_v8 = vld [vmem:[#allocation4 + $0x28] sm:$0xff] }
  0x69   : > { %v1214_v6 = vpack.c.bf16 %v669_v5, %v668_v3  ;;  %v1218_v9 = vpack.c.bf16 %v671_v8, %v670_v7  ;;  %v672_v10 = vld [vmem:[#allocation4 + $0x30] sm:$0xff]  ;;  %v673_v11 = vld [vmem:[#allocation4 + $0x38] sm:$0xff]  ;;  %v674_v13 = vld [vmem:[#allocation4 + $0x40] sm:$0xff] }
  0x6a   : > { %1211 = vmatprep.subr.bf16.mxu0 %v1210_v4  ;;  %v1222_v12 = vpack.c.bf16 %v673_v11, %v672_v10  ;;  %v675_v14 = vld [vmem:[#allocation4 + $0x48] sm:$0xff]  ;;  %v392_v19 = vld [vmem:[%s1661_s2] sm:$0x3]  ;;  %v677_v56 = vld [vmem:[#allocation4 + $0x58] sm:$0xff] }
  0x6b   : > { %1003 = vmatmul.mubr.msk.f32.gmra.mrb[4].mxu0 %vm404_vm0, %v382_v40  ;;  %1193 = vmatpush3.bf16.msra.mxu1 %v1192_v41  ;;  %v1226_v15 = vpack.c.bf16 %v675_v14, %v674_v13  ;;  %v397_v21 = vrot.slane %v392_v19, %v396_v18  ;;  %v401_v22 = vrot.slane %v392_v19, %v400_v20  ;;  %v679_v59 = vld [vmem:[#allocation4 + $0x68] sm:$0xff]  ;;  %v788_v2 = vld [vmem:[#allocation6 + $0x10] sm:$0xff]  ;;  %v793_v10 = vld [vmem:[#allocation6 + $0x38] sm:$0xff] }
  0x6c   : > { %499 = vmatprep.mubr.f32.mxu0 %v1421_v0  ;;  %1195 = vmatprep.subr.bf16.mxu1 %v1194_v42  ;;  %v1208_v0 = vpack.c.bf16 %v545_v63, %v544_v62  ;;  %v681_v62 = vld [vmem:[#allocation4 + $0x78] sm:$0xff]  ;;  %v787_v1 = vld [vmem:[#allocation6 + $0x8] sm:$0xff]  ;;  %v1005_v19 = vld [vmem:[%s1663_s4] ss:$0 sm:$0xff] }
  0x6d   : > { %1213 = vmatpush3.bf16.msra.mxu0 %v1210_v4  ;;  %v789_v4 = vld [vmem:[#allocation6 + $0x18] sm:$0xff]  ;;  %v791_v7 = vld [vmem:[#allocation6 + $0x28] sm:$0xff] }
  0x6e   : > { %1215 = vmatprep.subr.bf16.mxu0 %v1214_v6  ;;  %v1246_v5 = vpack.c.bf16 %v789_v4, %v788_v2  ;;  %v795_v13 = vld [vmem:[#allocation6 + $0x48] sm:$0xff]  ;;  %v797_v16 = vld [vmem:[#allocation6 + $0x58] sm:$0xff]  ;;  %v1007_v2 = vld [vmem:[%s1667_s8] ss:$0 sm:$0xff] }
  0x6f   : > { %1004 = vmatmul.mubr.msk.f32.gmra.mrb[6].mxu0 %vm404_vm0, %v383_v47  ;;  %1197 = vmatpush3.bf16.msra.mxu1 %v1196_v48 }
  0x70   : > { %1199 = vmatprep.subr.bf16.mxu1 %v1198_v49 }
  0x71   : > { %1217 = vmatpush3.bf16.msra.mxu0 %v1214_v6  ;;  %v790_v6 = vld [vmem:[#allocation6 + $0x20] sm:$0xff] }
  0x72   : > { %1219 = vmatprep.subr.bf16.mxu0 %v1218_v9  ;;  %v1250_v8 = vpack.c.bf16 %v791_v7, %v790_v6 }
  0x73   : > { %1201 = vmatpush3.bf16.msra.mxu1 %v1200_v52 }
  0x74   : > { %1203 = vmatprep.subr.bf16.mxu1 %v1202_v55  ;;  %v676_v55 = vld [vmem:[#allocation4 + $0x50] sm:$0xff] }
  0x75   : > { %1221 = vmatpush3.bf16.msra.mxu0 %v1218_v9  ;;  %v1230_v57 = vpack.c.bf16 %v677_v56, %v676_v55  ;;  %v792_v9 = vld [vmem:[#allocation6 + $0x30] sm:$0xff] }
  0x76   : > { %1223 = vmatprep.subr.bf16.mxu0 %v1222_v12  ;;  %v1254_v11 = vpack.c.bf16 %v793_v10, %v792_v9 }
  0x77   : > { %1205 = vmatpush3.bf16.msra.mxu1 %v1204_v58  ;;  %v678_v58 = vld [vmem:[#allocation4 + $0x60] sm:$0xff] }
  0x78   : > { %1207 = vmatprep.subr.bf16.mxu1 %v1206_v61  ;;  %v1234_v60 = vpack.c.bf16 %v679_v59, %v678_v58  ;;  %v680_v61 = vld [vmem:[#allocation4 + $0x70] sm:$0xff] }
  0x79   : > { %1225 = vmatpush3.bf16.msra.mxu0 %v1222_v12  ;;  %v1238_v63 = vpack.c.bf16 %v681_v62, %v680_v61  ;;  %v794_v12 = vld [vmem:[#allocation6 + $0x40] sm:$0xff] }
  0x7a   : > { %1227 = vmatprep.subr.bf16.mxu0 %v1226_v15  ;;  %v1258_v14 = vpack.c.bf16 %v795_v13, %v794_v12 }
  0x7b   : > { %1209 = vmatpush3.bf16.msra.mxu1 %v1208_v0  ;;  %v786_v0 = vld [vmem:[#allocation6] sm:$0xff] }
  0x7c   : > { %v1242_v3 = vpack.c.bf16 %v787_v1, %v786_v0 }
  0x7d   : > { %1229 = vmatpush3.bf16.msra.mxu0 %v1226_v15  ;;  %v796_v15 = vld [vmem:[#allocation6 + $0x50] sm:$0xff] }
  0x7e   : > { %1231 = vmatprep.subr.bf16.mxu0 %v1230_v57  ;;  %1243 = vmatprep.subr.bf16.mxu1 %v1242_v3  ;;  %v1262_v17 = vpack.c.bf16 %v797_v16, %v796_v15 }
  0x81   : > { %1233 = vmatpush3.bf16.msra.mxu0 %v1230_v57 }
  0x82   : > { %1235 = vmatprep.subr.bf16.mxu0 %v1234_v60 }
  0x85   : > { %1237 = vmatpush3.bf16.msra.mxu0 %v1234_v60 }
  0x86   : > { %1239 = vmatprep.subr.bf16.mxu0 %v1238_v63 }
  0x89   : > { %1241 = vmatpush3.bf16.msra.mxu0 %v1238_v63 }
 0x136   : > { %v483_v23 = vpop.f32.mrb[0].mxu0 }
 0x137   : > { %v484_v24 = vadd.f32 %v483_v23, %v397_v21  ;;  %v485_v25 = vpop.f32.mrb[1].mxu0 }
 0x138   : > { %v486_v26 = vadd.f32 %v485_v25, %v401_v22 }
 0x139   : > { %v514_v27 = vmul.f32 0.01, %v484_v24  ;;  %vm506_vm2 = vcmp.gt.f32.partialorder %v484_v24, 0.0 }
 0x13a   : > { %v489_v28 = vpop.f32.mrb[2].mxu0  ;;  %vm507_vm1 = vcmp.gt.f32.partialorder %v486_v26, 0.0  ;;  %v515_v29 = vmul.f32 0.01, %v486_v26 }
 0x13b   : > { %v490_v30 = vadd.f32 %v489_v28, %v397_v21  ;;  %v491_v31 = vpop.f32.mrb[3].mxu0  ;;  %v522_v35 = vsel %vm506_vm2, %v484_v24, %v514_v27 }
 0x13c   : > { %v492_v32 = vadd.f32 %v491_v31, %v401_v22  ;;  %v523_v33 = vsel %vm507_vm1, %v486_v26, %v515_v29  ;;  %vm894_vm1 = vcmask 64512  }
 0x13d   : > { %v516_v34 = vmul.f32 0.01, %v490_v30  ;;  %633 = vmatprep.mubr.f32.mxu1 %v523_v33  ;;  %vm508_vm4 = vcmp.gt.f32.partialorder %v490_v30, 0.0 }
 0x13e   : > { %v517_v36 = vmul.f32 0.01, %v492_v32  ;;  %v495_v37 = vpop.f32.mrb[4].mxu0  ;;  %634 = vmatmul.mubr.f32.vlgmr.msra.gmra.mrb[0].mxu1 %v522_v35  ;;  %vm509_vm3 = vcmp.gt.f32.partialorder %v492_v32, 0.0 }
 0x13f   : > { %v496_v38 = vadd.f32 %v495_v37, %v397_v21  ;;  %v497_v39 = vpop.f32.mrb[5].mxu0  ;;  %v524_v43 = vsel %vm508_vm4, %v490_v30, %v516_v34  ;;  %1245 = vmatpush3.bf16.msra.mxu1 %v1242_v3 }
 0x140   : > { %v498_v40 = vadd.f32 %v497_v39, %v401_v22  ;;  %v525_v41 = vsel %vm509_vm3, %v492_v32, %v517_v36  ;;  %1247 = vmatprep.subr.bf16.mxu1 %v1246_v5 }
 0x141   : > { %v518_v42 = vmul.f32 0.01, %v496_v38  ;;  %638 = vmatprep.mubr.f32.mxu1 %v525_v41  ;;  %vm510_vm6 = vcmp.gt.f32.partialorder %v496_v38, 0.0 }
 0x142   : > { %v519_v44 = vmul.f32 0.01, %v498_v40  ;;  %v501_v45 = vpop.f32.mrb[6].mxu0  ;;  %639 = vmatmul.mubr.f32.gmra.mrb[2].mxu1 %v524_v43  ;;  %vm511_vm5 = vcmp.gt.f32.partialorder %v498_v40, 0.0  ;;  %v798_v43 = vld [vmem:[#allocation6 + $0x60] sm:$0xff] }
 0x143   : > { %v502_v46 = vadd.f32 %v501_v45, %v397_v21  ;;  %v503_v47 = vpop.f32.mrb[7].mxu0  ;;  %v526_v51 = vsel %vm510_vm6, %v496_v38, %v518_v42  ;;  %1249 = vmatpush3.bf16.msra.mxu1 %v1246_v5 }
 0x144   : > { %v504_v48 = vadd.f32 %v503_v47, %v401_v22  ;;  %v527_v49 = vsel %vm511_vm5, %v498_v40, %v519_v44  ;;  %1251 = vmatprep.subr.bf16.mxu1 %v1250_v8  ;;  %v799_v44 = vld [vmem:[#allocation6 + $0x68] sm:$0xff]  ;;  %v801_v47 = vld [vmem:[#allocation6 + $0x78] sm:$0xff] }
 0x145   : > { %v520_v50 = vmul.f32 0.01, %v502_v46  ;;  %643 = vmatprep.mubr.f32.mxu1 %v527_v49  ;;  %vm512_vm8 = vcmp.gt.f32.partialorder %v502_v46, 0.0  ;;  %v1266_v45 = vpack.c.bf16 %v799_v44, %v798_v43  ;;  %v1006_v49 = vld [vmem:[%s1665_s6] ss:$0 sm:$0xff] }
 0x146   : > { %v521_v52 = vmul.f32 0.01, %v504_v48  ;;  %644 = vmatmul.mubr.f32.gmra.mrb[4].mxu1 %v526_v51  ;;  %vm513_vm7 = vcmp.gt.f32.partialorder %v504_v48, 0.0 }
 0x147   : > { %v528_v54 = vsel %vm512_vm8, %v502_v46, %v520_v50  ;;  %1253 = vmatpush3.bf16.msra.mxu1 %v1250_v8  ;;  %v800_v46 = vld [vmem:[#allocation6 + $0x70] sm:$0xff] }
 0x148   : > { %v529_v53 = vsel %vm513_vm7, %v504_v48, %v521_v52  ;;  %1255 = vmatprep.subr.bf16.mxu1 %v1254_v11  ;;  %v1270_v48 = vpack.c.bf16 %v801_v47, %v800_v46 }
 0x149   : > { %648 = vmatprep.mubr.f32.mxu1 %v529_v53 }
 0x14a   : > { %649 = vmatmul.mubr.f32.gmra.mrb[6].mxu1 %v528_v54 }
 0x14b   : > { %1257 = vmatpush3.bf16.msra.mxu1 %v1254_v11 }
 0x14c   : > { %1259 = vmatprep.subr.bf16.mxu1 %v1258_v14 }
 0x14f   : > { %1261 = vmatpush3.bf16.msra.mxu1 %v1258_v14 }
 0x150   : > { %1263 = vmatprep.subr.bf16.mxu1 %v1262_v17 }
 0x153   : > { %1265 = vmatpush3.bf16.msra.mxu1 %v1262_v17 }
 0x154   : > { %1267 = vmatprep.subr.bf16.mxu1 %v1266_v45 }
 0x157   : > { %1269 = vmatpush3.bf16.msra.mxu1 %v1266_v45 }
 0x158   : > { %1271 = vmatprep.subr.bf16.mxu1 %v1270_v48 }
 0x15b   : > { %1273 = vmatpush3.bf16.msra.mxu1 %v1270_v48 }
 0x211   : > { %v1042_v18 = vpop.f32.mrb[0].mxu1 }
 0x212   : > { %v1043_v20 = vpop.f32.mrb[1].mxu1 }
 0x213   : > { %v1044_v21 = vadd.f32 %v1043_v20, %v1042_v18 }
 0x215   : > { %v636_v22 = vadd.f32 %v1044_v21, %v1005_v19  ;;  %v1045_v23 = vpop.f32.mrb[2].mxu1 }
 0x216   : > { %v1046_v24 = vpop.f32.mrb[3].mxu1 }
 0x217   : > { %v1047_v25 = vadd.f32 %v1046_v24, %v1045_v23  ;;  %vm654_vm9 = vcmp.gt.f32.partialorder %v636_v22, 0.0  ;;  %v658_v26 = vmul.f32 0.01, %v636_v22 }
 0x219   : > { %v641_v27 = vadd.f32 %v1047_v25, %v1005_v19  ;;  %v1048_v28 = vpop.f32.mrb[4].mxu1  ;;  %v662_v29 = vsel %vm654_vm9, %v636_v22, %v658_v26 }
 0x21a   : > { %v1049_v30 = vpop.f32.mrb[5].mxu1  ;;  %1126 = vmatprep.mubr.f32.mxu0 %v662_v29 }
 0x21b   : > { %vm655_vm10 = vcmp.gt.f32.partialorder %v641_v27, 0.0  ;;  %v659_v31 = vmul.f32 0.01, %v641_v27  ;;  %v1050_v32 = vadd.f32 %v1049_v30, %v1048_v28 }
 0x21d   : > { %v646_v33 = vadd.f32 %v1050_v32, %v1005_v19  ;;  %v1051_v34 = vpop.f32.mrb[6].mxu1  ;;  %v663_v35 = vsel %vm655_vm10, %v641_v27, %v659_v31 }
 0x21e   : > { %v1052_v36 = vpop.f32.mrb[7].mxu1  ;;  %1127 = vmatmul.mubr.f32.vlgmr.msra.gmra.mrb[8].mxu0 %v663_v35 }
 0x21f   : > { %v1053_v37 = vadd.f32 %v1052_v36, %v1051_v34  ;;  %vm656_vm11 = vcmp.gt.f32.partialorder %v646_v33, 0.0  ;;  %v660_v38 = vmul.f32 0.01, %v646_v33 }
 0x221   : > { %v651_v39 = vadd.f32 %v1053_v37, %v1005_v19  ;;  %v664_v40 = vsel %vm656_vm11, %v646_v33, %v660_v38 }
 0x222   : > { %1129 = vmatprep.mubr.f32.mxu0 %v664_v40 }
 0x223   : > { %vm657_vm12 = vcmp.gt.f32.partialorder %v651_v39, 0.0  ;;  %v661_v41 = vmul.f32 0.01, %v651_v39 }
 0x225   : > { %v665_v42 = vsel %vm657_vm12, %v651_v39, %v661_v41 }
 0x226   : > { %1130 = vmatmul.mubr.f32.gmra.mrb[10].mxu0 %v665_v42 }
 0x2f1   : > { %v1128_v50 = vpop.f32.mrb[8].mxu0 }
 0x2f2   : > { %v761_v51 = vadd.f32 %v1128_v50, %v1006_v49  ;;  %v755_v52 = vpop.f32.mrb[9].mxu0 }
 0x2f3   : > { %v756_v53 = vadd.f32 %v1006_v49, %v755_v52 }
 0x2f4   : > { %v779_v54 = vmul.f32 0.01, %v761_v51  ;;  %vm775_vm13 = vcmp.gt.f32.partialorder %v761_v51, 0.0 }
 0x2f5   : > { %v778_v55 = vmul.f32 0.01, %v756_v53  ;;  %vm774_vm14 = vcmp.gt.f32.partialorder %v756_v53, 0.0 }
 0x2f6   : > { %v783_v57 = vsel %vm775_vm13, %v761_v51, %v779_v54 }
 0x2f7   : > { %v782_v56 = vsel %vm774_vm14, %v756_v53, %v778_v55 }
 0x2f8   : > { %1164 = vmatprep.mubr.f32.mxu1 %v782_v56 }
 0x2f9   : > { %v1131_v58 = vpop.f32.mrb[10].mxu0  ;;  %1165 = vmatmul.mubr.f32.vlgmr.msra.gmra.mrb[8].mxu1 %v783_v57 }
 0x2fa   : > { %v771_v59 = vadd.f32 %v1131_v58, %v1006_v49  ;;  %v765_v60 = vpop.f32.mrb[11].mxu0 }
 0x2fb   : > { %v766_v61 = vadd.f32 %v1006_v49, %v765_v60 }
 0x2fc   : > { %v781_v62 = vmul.f32 0.01, %v771_v59  ;;  %vm777_vm0 = vcmp.gt.f32.partialorder %v771_v59, 0.0 }
 0x2fd   : > { %v780_v63 = vmul.f32 0.01, %v766_v61  ;;  %vm776_vm15 = vcmp.gt.f32.partialorder %v766_v61, 0.0 }
 0x2fe   : > { %v785_v1 = vsel %vm777_vm0, %v771_v59, %v781_v62 }
 0x2ff   : > { %v784_v0 = vsel %vm776_vm15, %v766_v61, %v780_v63 }
 0x300   : > { %1167 = vmatprep.mubr.f32.mxu1 %v784_v0 }
 0x301   : > { %1168 = vmatmul.mubr.f32.gmra.mrb[10].mxu1 %v785_v1 }
 0x3cc   : > { %v1166_v3 = vpop.f32.mrb[8].mxu1 }
 0x3cd   : > { %v875_v4 = vpop.f32.mrb[9].mxu1  ;;  %v881_v6 = vadd.f32 %v1166_v3, %v1007_v2 }
 0x3ce   : > { %v876_v5 = vadd.f32 %v1007_v2, %v875_v4 }
 0x3cf   : > { %896 = vst.msk [vmem:[%s378_s21 + $0x8] sm:$0xff] %vm894_vm1, %v881_v6 }
 0x3d0   : > { %895 = vst.msk [vmem:[%s378_s21] sm:$0xff] %vm894_vm1, %v876_v5 }
 0x3d4   : > { %v1169_v7 = vpop.f32.mrb[10].mxu1 }
 0x3d5   : > { %v885_v8 = vpop.f32.mrb[11].mxu1  ;;  %v891_v10 = vadd.f32 %v1169_v7, %v1007_v2 }
 0x3d6   : > { %v886_v9 = vadd.f32 %v1007_v2, %v885_v8 }
 0x3d7   : > { %898 = vst.msk [vmem:[%s378_s21 + $0x18] sm:$0xff] %vm894_vm1, %v891_v10 }
 0x3d8   : > { %897 = vst.msk [vmem:[%s378_s21 + $0x10] sm:$0xff] %vm894_vm1, %v886_v9 }
 0x3d9 PF: > { %s21_s30 = sadd.s32 1, %s1414_s30  }
 0x3da   : > { %p18_p3 = scmp.ge.s32.totalorder %s21_s30, 4  }
 0x3dc   :  { %20 = sbr.rel (!%p18_p3) target bundleno = 2 (0x2), region = 99 }
 0x3e3   :  { %921 = vsyncpa [#allocation3], 1 }
 0x3e4   :  { %923 = vsyncpa [#allocation3 + $0x1], 1 }
 0x3e5   :  { %924 = vsyncpa [#allocation5], 1 }

</bundles_post_ra>
